<compile_context>
chip_gen: v7x
topology: tpu7x:2x2x1
jax: 0.10.0
libtpu: 0.0.40
codegen_flags: <defaults>
</compile_context>

<pallas_src>
import jax
import jax.numpy as jnp
import numpy as np
from jax.experimental import pallas as pl
from jax.experimental.pallas import tpu as pltpu

_NEG_BIG = -1e30   # finite "minus infinity" as a PYTHON float (no traced capture)


def _global_attention_pool_kernel(x_ref, batch_ref, w1_ref, b1_ref, w2_ref, b2_ref,
                                  out_ref, m_sc, s_sc, acc_sc):
    i = pl.program_id(0)

    @pl.when(i == 0)
    def _init():
        m_sc[...] = jnp.full_like(m_sc, _NEG_BIG)
        s_sc[...] = jnp.zeros_like(s_sc)
        acc_sc[...] = jnp.zeros_like(acc_sc)

    x = x_ref[...]                                             # (T, C), native dtype
    T = x.shape[0]
    B = out_ref.shape[0]

    # ---- gate MLP: Linear(C,C) -> ReLU, f32 accumulation on the MXU ----
    h = jnp.dot(x, w1_ref[...], preferred_element_type=jnp.float32)
    h = jnp.maximum(h + b1_ref[...].astype(jnp.float32), 0.0)  # (T, C) f32

    # ---- C -> 1 projection as VPU mul + lane reduction (no 1-column matmul) ----
    gate = jnp.sum(h * w2_ref[...].astype(jnp.float32), axis=-1, keepdims=True)
    gate = gate + b2_ref[0]                                    # (T, 1); b2 cancels in softmax
    g_row = gate.reshape(1, T)                                 # (1, T)  (same element order)

    # ---- per-graph membership and online segment softmax update ----
    b_ids = jax.lax.broadcasted_iota(jnp.int32, (B, T), 0)     # (B, T)
    mask = batch_ref[...] == b_ids                             # (B, T)
    masked = jnp.where(mask, g_row, _NEG_BIG)                  # (B, T)

    m_tile = jnp.max(masked, axis=1, keepdims=True)            # (B, 1)
    m_new = jnp.maximum(m_sc[...], m_tile)                     # (B, 1)
    corr = jnp.exp(m_sc[...] - m_new)                          # (B, 1) rescale factor
    e = jnp.where(mask, jnp.exp(masked - m_new), 0.0)          # (B, T)

    s_sc[...] = corr * s_sc[...] + jnp.sum(e, axis=1, keepdims=True)
    acc_sc[...] = corr * acc_sc[...] + jnp.dot(
        e.astype(x.dtype), x, preferred_element_type=jnp.float32)   # (B, C)
    m_sc[...] = m_new

    @pl.when(i == pl.num_programs(0) - 1)
    def _finalize():
        s_safe = jnp.maximum(s_sc[...], 1e-30)                 # empty graph -> 0, not NaN
        out_ref[...] = (acc_sc[...] * pl.reciprocal(s_safe)).astype(out_ref.dtype)


def global_sa_module(x, batch, params, num_graphs, *, n_tile=256):
    """x: [N, C] float, batch: [N] int32 graph ids in [0, num_graphs)."""
    N, C = x.shape
    w1, b1, w2, b2 = params

    # Pad N up to a multiple of the tile; padded rows get an out-of-range batch
    # id so the per-graph mask never selects them.
    n_pad = pl.cdiv(N, n_tile) * n_tile
    if n_pad != N:
        x = jnp.pad(x, ((0, n_pad - N), (0, 0)))
        batch = jnp.pad(batch, (0, n_pad - N), constant_values=num_graphs)

    batch_row = batch.reshape(1, n_pad).astype(jnp.int32)
    b1_row = b1.reshape(1, C)
    w2_row = w2.reshape(1, C)                # (C,1) -> (1,C), same data order
    b2_s = b2.reshape(1).astype(jnp.float32)

    bytes_x = int(n_pad * C * x.dtype.itemsize)
    cost = pl.CostEstimate(
        flops=int(2 * n_pad * C * C + 2 * n_pad * C + 2 * num_graphs * n_pad * C),
        transcendentals=int(num_graphs * n_pad),
        bytes_accessed=int(bytes_x + 4 * n_pad + 4 * (C * C + 2 * C + 1)
                           + num_graphs * C * x.dtype.itemsize),
    )

    return pl.pallas_call(
        _global_attention_pool_kernel,
        out_shape=jax.ShapeDtypeStruct((num_graphs, C), x.dtype),
        grid=(n_pad // n_tile,),
        in_specs=[
            pl.BlockSpec((n_tile, C), lambda i: (i, 0)),          # x tile (streamed)
            pl.BlockSpec((1, n_tile), lambda i: (0, i)),          # batch ids tile
            pl.BlockSpec((C, C), lambda i: (0, 0)),               # w1 (resident)
            pl.BlockSpec((1, C), lambda i: (0, 0)),               # b1
            pl.BlockSpec((1, C), lambda i: (0, 0)),               # w2 as a row
            pl.BlockSpec(memory_space=pltpu.MemorySpace.SMEM),    # b2 scalar
        ],
        out_specs=pl.BlockSpec((num_graphs, C), lambda i: (0, 0)),
        scratch_shapes=[
            pltpu.VMEM((num_graphs, 1), jnp.float32),   # running max  m_b
            pltpu.VMEM((num_graphs, 1), jnp.float32),   # running sum  s_b
            pltpu.VMEM((num_graphs, C), jnp.float32),   # running weighted-sum acc
        ],
        compiler_params=pltpu.CompilerParams(dimension_semantics=("arbitrary",)),
        cost_estimate=cost,
    )(x, batch_row, w1, b1_row, w2_row, b2_s)


def _reference(x, batch, params, num_graphs):
    """Pure-JAX reference of GlobalAttention pooling (sanity check)."""
    w1, b1, w2, b2 = params
    h = jnp.maximum(x @ w1 + b1, 0.0)
    gate = (h @ w2 + b2)[:, 0]                                        # (N,)
    one_hot = batch[None, :] == jnp.arange(num_graphs)[:, None]       # (B, N)
    masked = jnp.where(one_hot, gate[None, :], -1e30)
    m = jnp.max(masked, axis=1, keepdims=True)
    e = jnp.where(one_hot, jnp.exp(masked - m), 0.0)
    alpha = e / jnp.sum(e, axis=1, keepdims=True)
    return alpha @ x


if __name__ == "__main__":
    key = jax.random.PRNGKey(0)
    N, C, B = 600, 128, 3                        # nodes, nIn, num graphs (N not tile-aligned)
    k1, k2, k3, k4, k5 = jax.random.split(key, 5)

    x = jax.random.normal(k1, (N, C), dtype=jnp.float32)
    # Uneven graph sizes: 200 / 250 / 150 nodes.
    batch = jnp.concatenate([
        jnp.zeros(200, jnp.int32),
        jnp.ones(250, jnp.int32),
        jnp.full((150,), 2, jnp.int32),
    ])

    # Gate-MLP parameters: Linear(C,C) + ReLU + Linear(C,1), bias=True.
    w1 = jax.random.normal(k2, (C, C), jnp.float32) * 0.1
    b1 = jax.random.normal(k3, (C,), jnp.float32) * 0.01
    w2 = jax.random.normal(k4, (C, 1), jnp.float32) * 0.1
    b2 = jax.random.normal(k5, (1,), jnp.float32) * 0.01
    params = (w1, b1, w2, b2)

    out = global_sa_module(x, batch, params, num_graphs=B, n_tile=128)
    out = jax.block_until_ready(out)

    ref = _reference(x, batch, params, B)
    assert out.shape == (B, C)
    np.testing.assert_allclose(np.asarray(out), np.asarray(ref), rtol=1e-4, atol=1e-5)

    print("KERNEL_OK")
</pallas_src>

<mosaic_0001>
module attributes {stable_mosaic.version = 11 : i64} {
  func.func @_global_attention_pool_kernel(%arg0: i32, %arg1: memref<128x128xf32, #tpu.memory_space<vmem>>, %arg2: memref<1x128xi32, #tpu.memory_space<vmem>>, %arg3: memref<128x128xf32, #tpu.memory_space<vmem>>, %arg4: memref<1x128xf32, #tpu.memory_space<vmem>>, %arg5: memref<1x128xf32, #tpu.memory_space<vmem>>, %arg6: memref<1xf32, #tpu.memory_space<smem>>, %arg7: memref<3x128xf32, #tpu.memory_space<vmem>>, %arg8: memref<3x1xf32, #tpu.memory_space<vmem>>, %arg9: memref<3x1xf32, #tpu.memory_space<vmem>>, %arg10: memref<3x128xf32, #tpu.memory_space<vmem>>) attributes {dimension_semantics = [#tpu.dimension_semantics<arbitrary>], iteration_bounds = array<i64: 5>, scalar_prefetch = 0 : i64, scratch_operands = 3 : i64, tpu.core_type = #tpu.core_type<tc>, window_params = [{transform_indices = @transform_0, window_bounds = array<i64: 128, 128>}, {transform_indices = @transform_1, window_bounds = array<i64: 1, 128>}, {pipeline_mode = #tpu.pipeline_mode<synchronous>, transform_indices = @transform_2, window_bounds = array<i64: 128, 128>}, {pipeline_mode = #tpu.pipeline_mode<synchronous>, transform_indices = @transform_3, window_bounds = array<i64: 1, 128>}, {pipeline_mode = #tpu.pipeline_mode<synchronous>, transform_indices = @transform_4, window_bounds = array<i64: 1, 128>}, {transform_indices = @transform_5, window_bounds = array<i64: 1>}, {pipeline_mode = #tpu.pipeline_mode<synchronous>, transform_indices = @transform_6, window_bounds = array<i64: 3, 128>}]} {
    %c0_i32 = arith.constant 0 : i32
    %0 = arith.cmpi eq, %arg0, %c0_i32 : i32
    %1 = arith.extui %0 : i1 to i32
    %c0_i32_0 = arith.constant 0 : i32
    %2 = arith.cmpi ne, %1, %c0_i32_0 : i32
    scf.if %2 {
      %cst_33 = arith.constant -1.000000e+30 : f32
      %56 = vector.broadcast %cst_33 : f32 to vector<3x1xf32>
      %c0_34 = arith.constant 0 : index
      %c0_35 = arith.constant 0 : index
      %57 = vector.load %arg8[%c0_34, %c0_35] : memref<3x1xf32, #tpu.memory_space<vmem>>, vector<3x1xf32>
      tpu.vector_store %arg8[%c0_34, %c0_35], %56 {strides = array<i32>} : memref<3x1xf32, #tpu.memory_space<vmem>>, vector<3x1xf32>,
      %cst_36 = arith.constant 0.000000e+00 : f32
      %58 = vector.broadcast %cst_36 : f32 to vector<3x1xf32>
      %c0_37 = arith.constant 0 : index
      %c0_38 = arith.constant 0 : index
      %59 = vector.load %arg9[%c0_37, %c0_38] : memref<3x1xf32, #tpu.memory_space<vmem>>, vector<3x1xf32>
      tpu.vector_store %arg9[%c0_37, %c0_38], %58 {strides = array<i32>} : memref<3x1xf32, #tpu.memory_space<vmem>>, vector<3x1xf32>,
      %cst_39 = arith.constant 0.000000e+00 : f32
      %60 = vector.broadcast %cst_39 : f32 to vector<3x128xf32>
      %c0_40 = arith.constant 0 : index
      %c0_41 = arith.constant 0 : index
      %61 = vector.load %arg10[%c0_40, %c0_41] : memref<3x128xf32, #tpu.memory_space<vmem>>, vector<3x128xf32>
      tpu.vector_store %arg10[%c0_40, %c0_41], %60 {strides = array<i32>} : memref<3x128xf32, #tpu.memory_space<vmem>>, vector<3x128xf32>,
    } else {
    }
    %c0 = arith.constant 0 : index
    %c0_1 = arith.constant 0 : index
    %3 = vector.load %arg1[%c0, %c0_1] : memref<128x128xf32, #tpu.memory_space<vmem>>, vector<128x128xf32>
    %c0_2 = arith.constant 0 : index
    %c0_3 = arith.constant 0 : index
    %4 = vector.load %arg3[%c0_2, %c0_3] : memref<128x128xf32, #tpu.memory_space<vmem>>, vector<128x128xf32>
    %cst = arith.constant dense<0.000000e+00> : vector<128x128xf32>
    %5 = tpu.matmul %3, %4, %cst {dimension_numbers = #tpu.dot_dimension_numbers<[1], [0], [0], [1], [0, 0, 1, 1], [], []>} : vector<128x128xf32>, vector<128x128xf32>, vector<128x128xf32> -> vector<128x128xf32>
    %c0_4 = arith.constant 0 : index
    %c0_5 = arith.constant 0 : index
    %6 = vector.load %arg4[%c0_4, %c0_5] : memref<1x128xf32, #tpu.memory_space<vmem>>, vector<1x128xf32>
    %7 = vector.broadcast %6 : vector<1x128xf32> to vector<128x128xf32>
    %8 = arith.addf %5, %7 : vector<128x128xf32>
    %cst_6 = arith.constant 0.000000e+00 : f32
    %9 = vector.broadcast %cst_6 : f32 to vector<128x128xf32>
    %10 = arith.maximumf %8, %9 : vector<128x128xf32>
    %c0_7 = arith.constant 0 : index
    %c0_8 = arith.constant 0 : index
    %11 = vector.load %arg5[%c0_7, %c0_8] : memref<1x128xf32, #tpu.memory_space<vmem>>, vector<1x128xf32>
    %12 = vector.broadcast %11 : vector<1x128xf32> to vector<128x128xf32>
    %13 = arith.mulf %10, %12 : vector<128x128xf32>
    %cst_9 = arith.constant dense<0.000000e+00> : vector<128xf32>
    %14 = vector.multi_reduction <add>, %13, %cst_9 [1] : vector<128x128xf32> to vector<128xf32>
    %15 = vector.shape_cast %14 : vector<128xf32> to vector<128x1xf32>
    %c0_10 = arith.constant 0 : index
    %16 = memref.load %arg6[%c0_10] : memref<1xf32, #tpu.memory_space<smem>>
    %17 = vector.broadcast %16 : f32 to vector<128x1xf32>
    %18 = arith.addf %15, %17 : vector<128x1xf32>
    %19 = vector.shape_cast %18 : vector<128x1xf32> to vector<1x128xf32>
    %20 = tpu.iota {dimensions = array<i32: 0>} : vector<3x128xi32>
    %c0_11 = arith.constant 0 : index
    %c0_12 = arith.constant 0 : index
    %21 = vector.load %arg2[%c0_11, %c0_12] : memref<1x128xi32, #tpu.memory_space<vmem>>, vector<1x128xi32>
    %22 = vector.broadcast %21 : vector<1x128xi32> to vector<3x128xi32>
    %23 = arith.cmpi eq, %22, %20 : vector<3x128xi32>
    %cst_13 = arith.constant -1.000000e+30 : f32
    %24 = vector.shape_cast %19 : vector<1x128xf32> to vector<1x128xf32>
    %25 = vector.broadcast %24 : vector<1x128xf32> to vector<3x128xf32>
    %26 = vector.broadcast %cst_13 : f32 to vector<3x128xf32>
    %27 = arith.select %23, %25, %26 : vector<3x128xi1>, vector<3x128xf32>
    %cst_14 = arith.constant dense<0xFF800000> : vector<3xf32>
    %28 = vector.multi_reduction <maximumf>, %27, %cst_14 [1] : vector<3x128xf32> to vector<3xf32>
    %29 = vector.shape_cast %28 : vector<3xf32> to vector<3x1xf32>
    %c0_15 = arith.constant 0 : index
    %c0_16 = arith.constant 0 : index
    %30 = vector.load %arg8[%c0_15, %c0_16] : memref<3x1xf32, #tpu.memory_space<vmem>>, vector<3x1xf32>
    %31 = arith.maximumf %30, %29 : vector<3x1xf32>
    %c0_17 = arith.constant 0 : index
    %c0_18 = arith.constant 0 : index
    %32 = vector.load %arg8[%c0_17, %c0_18] : memref<3x1xf32, #tpu.memory_space<vmem>>, vector<3x1xf32>
    %33 = arith.subf %32, %31 : vector<3x1xf32>
    %34 = math.exp %33 : vector<3x1xf32>
    %35 = vector.broadcast %31 : vector<3x1xf32> to vector<3x128xf32>
    %36 = arith.subf %27, %35 : vector<3x128xf32>
    %37 = math.exp %36 : vector<3x128xf32>
    %cst_19 = arith.constant 0.000000e+00 : f32
    %38 = vector.broadcast %cst_19 : f32 to vector<3x128xf32>
    %39 = arith.select %23, %37, %38 : vector<3x128xi1>, vector<3x128xf32>
    %c0_20 = arith.constant 0 : index
    %c0_21 = arith.constant 0 : index
    %40 = vector.load %arg9[%c0_20, %c0_21] : memref<3x1xf32, #tpu.memory_space<vmem>>, vector<3x1xf32>
    %41 = arith.mulf %34, %40 : vector<3x1xf32>
    %cst_22 = arith.constant dense<0.000000e+00> : vector<3xf32>
    %42 = vector.multi_reduction <add>, %39, %cst_22 [1] : vector<3x128xf32> to vector<3xf32>
    %43 = vector.shape_cast %42 : vector<3xf32> to vector<3x1xf32>
    %44 = arith.addf %41, %43 : vector<3x1xf32>
    %c0_23 = arith.constant 0 : index
    %c0_24 = arith.constant 0 : index
    %45 = vector.load %arg9[%c0_23, %c0_24] : memref<3x1xf32, #tpu.memory_space<vmem>>, vector<3x1xf32>
    tpu.vector_store %arg9[%c0_23, %c0_24], %44 {strides = array<i32>} : memref<3x1xf32, #tpu.memory_space<vmem>>, vector<3x1xf32>,
    %c0_25 = arith.constant 0 : index
    %c0_26 = arith.constant 0 : index
    %46 = vector.load %arg10[%c0_25, %c0_26] : memref<3x128xf32, #tpu.memory_space<vmem>>, vector<3x128xf32>
    %47 = vector.broadcast %34 : vector<3x1xf32> to vector<3x128xf32>
    %48 = arith.mulf %47, %46 : vector<3x128xf32>
    %cst_27 = arith.constant dense<0.000000e+00> : vector<3x128xf32>
    %49 = tpu.matmul %39, %3, %cst_27 {dimension_numbers = #tpu.dot_dimension_numbers<[1], [0], [0], [1], [0, 0, 1, 1], [], []>} : vector<3x128xf32>, vector<128x128xf32>, vector<3x128xf32> -> vector<3x128xf32>
    %50 = arith.addf %48, %49 : vector<3x128xf32>
    %c0_28 = arith.constant 0 : index
    %c0_29 = arith.constant 0 : index
    %51 = vector.load %arg10[%c0_28, %c0_29] : memref<3x128xf32, #tpu.memory_space<vmem>>, vector<3x128xf32>
    tpu.vector_store %arg10[%c0_28, %c0_29], %50 {strides = array<i32>} : memref<3x128xf32, #tpu.memory_space<vmem>>, vector<3x128xf32>,
    %c0_30 = arith.constant 0 : index
    %c0_31 = arith.constant 0 : index
    %52 = vector.load %arg8[%c0_30, %c0_31] : memref<3x1xf32, #tpu.memory_space<vmem>>, vector<3x1xf32>
    tpu.vector_store %arg8[%c0_30, %c0_31], %31 {strides = array<i32>} : memref<3x1xf32, #tpu.memory_space<vmem>>, vector<3x1xf32>,
    %c4_i32 = arith.constant 4 : i32
    %53 = arith.cmpi eq, %arg0, %c4_i32 : i32
    %54 = arith.extui %53 : i1 to i32
    %c0_i32_32 = arith.constant 0 : i32
    %55 = arith.cmpi ne, %54, %c0_i32_32 : i32
    scf.if %55 {
      %c0_33 = arith.constant 0 : index
      %c0_34 = arith.constant 0 : index
      %56 = vector.load %arg9[%c0_33, %c0_34] : memref<3x1xf32, #tpu.memory_space<vmem>>, vector<3x1xf32>
      %cst_35 = arith.constant 1.000000e-30 : f32
      %57 = vector.broadcast %cst_35 : f32 to vector<3x1xf32>
      %58 = arith.maximumf %56, %57 : vector<3x1xf32>
      %c0_36 = arith.constant 0 : index
      %c0_37 = arith.constant 0 : index
      %59 = vector.load %arg10[%c0_36, %c0_37] : memref<3x128xf32, #tpu.memory_space<vmem>>, vector<3x128xf32>
      %60 = tpu.reciprocal %58 : vector<3x1xf32> -> vector<3x1xf32>
      %61 = vector.broadcast %60 : vector<3x1xf32> to vector<3x128xf32>
      %62 = arith.mulf %59, %61 : vector<3x128xf32>
      %c0_38 = arith.constant 0 : index
      %c0_39 = arith.constant 0 : index
      %63 = vector.load %arg7[%c0_38, %c0_39] : memref<3x128xf32, #tpu.memory_space<vmem>>, vector<3x128xf32>
      tpu.vector_store %arg7[%c0_38, %c0_39], %62 {strides = array<i32>} : memref<3x128xf32, #tpu.memory_space<vmem>>, vector<3x128xf32>,
    } else {
    }
    return
  }
  func.func @transform_0(%arg0: i32) -> (i32, i32) {
    %c0_i32 = arith.constant 0 : i32
    %c0_i32_0 = arith.constant 0 : i32
    return %arg0, %c0_i32 : i32, i32
  }
  func.func @transform_1(%arg0: i32) -> (i32, i32) {
    %c0_i32 = arith.constant 0 : i32
    %c0_i32_0 = arith.constant 0 : i32
    return %c0_i32, %arg0 : i32, i32
  }
  func.func @transform_2(%arg0: i32) -> (i32, i32) {
    %c0_i32 = arith.constant 0 : i32
    %c0_i32_0 = arith.constant 0 : i32
    %c0_i32_1 = arith.constant 0 : i32
    return %c0_i32, %c0_i32_0 : i32, i32
  }
  func.func @transform_3(%arg0: i32) -> (i32, i32) {
    %c0_i32 = arith.constant 0 : i32
    %c0_i32_0 = arith.constant 0 : i32
    %c0_i32_1 = arith.constant 0 : i32
    return %c0_i32, %c0_i32_0 : i32, i32
  }
  func.func @transform_4(%arg0: i32) -> (i32, i32) {
    %c0_i32 = arith.constant 0 : i32
    %c0_i32_0 = arith.constant 0 : i32
    %c0_i32_1 = arith.constant 0 : i32
    return %c0_i32, %c0_i32_0 : i32, i32
  }
  func.func @transform_5(%arg0: i32) -> i32 {
    %c0_i32 = arith.constant 0 : i32
    %c0_i32_0 = arith.constant 0 : i32
    return %c0_i32 : i32
  }
  func.func @transform_6(%arg0: i32) -> (i32, i32) {
    %c0_i32 = arith.constant 0 : i32
    %c0_i32_0 = arith.constant 0 : i32
    %c0_i32_1 = arith.constant 0 : i32
    return %c0_i32, %c0_i32_0 : i32, i32
  }
}

</mosaic_0001>

<bundles_post_ra>
// kernel: tpu_custom_call.1
= control target key start
LH: loop header
LB: loop body
LE: loop exit
PB: predicated region body
PF: predicated region fallthrough
CT: control target
= control target key end

     0   :  { %s1770_s0 = inlined_call_operand.hbm [shape: f32[640,128], index: 0, kind: input, shape index: {}]   ;;  %s1771_s1 = inlined_call_operand.vmem [shape: s32[1,640], index: 1, kind: input, shape index: {}]   ;;  %s1772_s2 = inlined_call_operand.hbm [shape: f32[128,128], index: 2, kind: input, shape index: {}]   ;;  %s1773_s3 = inlined_call_operand.vmem [shape: f32[1,128], index: 3, kind: input, shape index: {}]   ;;  %s1774_s4 = inlined_call_operand.vmem [shape: f32[1,128], index: 4, kind: input, shape index: {}]   ;;  %s1775_s5 = inlined_call_operand.<no memory space> [shape: f32[1], index: 5, kind: input, shape index: {}]   ;;  %s1776_s6 = inlined_call_operand.hbm [shape: f32[3,128], index: 6, kind: output, shape index: {}]  }
   0x1   :  { %11 = sst [smem:[#allocation5]] %s1775_s5 }
   0x2   :  { %12 = vsyncpa [#allocation7], 0 }
   0x3   :  { %14 = vsyncpa [#allocation7 + $0x1], 0 }
   0x4   :  { %15 = vsyncpa [#allocation10], 0 }
   0x5   :  { %16 = vsyncpa [#allocation8], 0  ;;  %s1376_s23 = smov 0   ;;  %s1378_s24 = smov 0  }
   0x6   :  { %s1380_s25 = smov 0   ;;  %s1382_s26 = smov 0  }
   0x7 LB: > { %s1395_s5 = sadd.s32 4294967295, %s1324_s26   ;;  %p42_p0 = scmp.ne.s32.totalorder %s1316_s24, %s1312_s23  ;;  %s1324_s26 = sphi %s1382_s26, %s1793_s26   ;;  %s1320_s25 = sphi %s1380_s25, %s1792_s25   ;;  %s1316_s24 = sphi %s1378_s24, %s1791_s24   ;;  %s1312_s23 = sphi %s1376_s23, %s1790_s23  }
   0x8   : > { %p1777_p1 = scmp.eq.s32.totalorder %s1395_s5, 0  ;;  %p907_p2 = scmp.ge.s32.totalorder %s1324_s26, 1 }
   0x9   : > { %p184_p3 = scmp.lt.s32.totalorder %s1324_s26, 6  ;;  %s1326_s29 = smov [#allocation9]  }
   0xa   : > { %p1404_p5 = por %p1777_p1, %p42_p0  ;;  %s196_s30 = sshll.u32 %s1326_s29, 4  ;;  %s197_s30 = int_to_ptr.vmem [resolvable:$true] %s196_s30 }
   0xb   : > { %p1408_p6 = pnand %p907_p2, %p184_p3  ;;  %s1421_s8 = sadd.s32 1, %s1324_s26  }
   0xc   : > { %s1780_s27 = scalar_select %p1404_p5, 1, 0 }
   0xd   : > { %s1781_s28 = scalar_select %p1408_p6, 1, 0 }
   0xe   : > { %p1133_p7 = pneg %p1408_p6  ;;  %s29_s9 = sadd.s32 1, %s1320_s25 }
   0xf   : > { %s26_s10 = ssub.s32 %s1324_s26, %s1421_s8  ;;  %s1198_s13 = scalar_lea.hbm %s1772_s2, 2048 }
  0x10   : > { %p1416_p8 = pnand %p1133_p7, %p1777_p1  ;;  %p1199_p9 = scmp.ne.s32.totalorder %s1772_s2, %s1198_s13 }
  0x11   : > { %p1205_p13 = scmp.lt.u32.totalorder %s1198_s13, %s1772_s2 }
  0x12   : > { %p1200_p10 = pneg %p1416_p8 }
  0x14   : > { %p1201_p11 = pnand %p1200_p10, %p1199_p9 }
  0x16   : > { %p1202_p12 = pneg %p1201_p11 }
  0x18   : > { %p1207_p0 = pnand %p1205_p13, %p1202_p12 }
  0x1a   : > { %1210 = shalt.err (!%p1207_p0)
}
  0x1b   : > { %s1211_s18 = scalar_lea.vmem %s197_s30, 2048  ;;  %p1219_p4 = scmp.lt.s32.totalorder %s197_s30, %s197_s30 }
  0x1c   : > { %p1212_p2 = scmp.ne.s32.totalorder %s197_s30, %s1211_s18  ;;  %p1220_p1 = scmp.lt.s32.totalorder %s1211_s18, %s1211_s18 }
  0x1e   : > { %p1214_p3 = pnand %p1212_p2, %p1200_p10  ;;  %p1221_p5 = por %p1220_p1, %p1219_p4 }
  0x20   : > { %p1215_p7 = pneg %p1214_p3 }
  0x22   : > { %p1222_p6 = pnand %p1221_p5, %p1215_p7 }
  0x24   : > { %1225 = shalt.err (!%p1222_p6)
}
  0x25   : > { %s1327_s19 = smov 128   ;;  %s1328_s20 = smov 8  }
  0x26   : > { %1136 = dma.hbm_to_vmem [thread:$0]  (!%p1416_p8), %s1772_s2, 2048, %s197_s30, [#allocation10], %s1327_s19, %s1327_s19, %s1328_s20  }
  0x27   : > { %p27_p1 = scmp.eq.s32.totalorder %s26_s10, 0  ;;  %p36_p4 = scmp.ne.s32.totalorder %s1320_s25, %s1316_s24 }
  0x28   : > { %p37_p5 = scmp.eq.s32.totalorder %s1324_s26, 0  ;;  %p1142_p6 = scmp.lt.s32.totalorder %s1324_s26, 5 }
  0x29   : > { %s1450_s23 = scalar_select %p27_p1, %s1320_s25, %s29_s9  }
  0x2a   : > { %p38_p9 = por %p37_p5, %p36_p4  ;;  %s219_s29 = sand.u32 1, %s1320_s25  }
  0x2b   : > { %s910_s11 = sshll.u32 %s219_s29, 7  ;;  %s926_s12 = sshll.u32 %s1324_s26, 11 }
  0x2c   : > { %s1457_s7 = scalar_lea.hbm %s1770_s0, %s926_s12  ;;  %s223_s30 = scalar_lea.vmem [#allocation6], %s910_s11 }
  0x2d   : > { %s230_s10 = sshll.u32 %s223_s30, 4  ;;  %p1461_p8 = pnand %p1142_p6, %p38_p9  ;;  %s1459_s10 = int_to_ptr.vmem [resolvable:$true] %s230_s10 }
  0x2e   : > { %s1465_s26 = scalar_lea.sflag [#allocation7], %s219_s29  ;;  %s1226_s15 = scalar_lea.hbm %s1457_s7, 2048 }
  0x2f   : > { %p1227_p10 = scmp.ne.s32.totalorder %s1457_s7, %s1226_s15  ;;  %p1228_p11 = pneg %p1461_p8 }
  0x30   : > { %s1231_s18 = scalar_lea.hbm %s1770_s0, 10240  ;;  %p1232_p0 = scmp.lt.u32.totalorder %s1457_s7, %s1770_s0 }
  0x31   : > { %p1229_p12 = pnand %p1228_p11, %p1227_p10  ;;  %p1233_p2 = scmp.lt.u32.totalorder %s1231_s18, %s1226_s15 }
  0x32   : > { %p1235_p7 = scmp.lt.u32.totalorder %s1226_s15, %s1457_s7 }
  0x33   : > { %p1230_p13 = pneg %p1229_p12  ;;  %p1234_p3 = por %p1233_p2, %p1232_p0 }
  0x35   : > { %p1236_p1 = por %p1235_p7, %p1234_p3 }
  0x37   : > { %p1237_p4 = pnand %p1236_p1, %p1230_p13 }
  0x39   : > { %1240 = shalt.err (!%p1237_p4)
}
  0x3a   : > { %s1241_s29 = scalar_lea.vmem %s1459_s10, 2048  ;;  %s1329_s11 = smov [#allocation6]  }
  0x3b   : > { %p1242_p5 = scmp.ne.s32.totalorder %s1459_s10, %s1241_s29  ;;  %s1246_s12 = sshll.u32 %s1329_s11, 4  ;;  %s1247_s12 = int_to_ptr.vmem [resolvable:$false] %s1246_s12 }
  0x3c   : > { %s1248_s13 = scalar_lea.vmem %s1247_s12, 4096  ;;  %p1249_p10 = scmp.lt.s32.totalorder %s1459_s10, %s1247_s12 }
  0x3d   : > { %p1244_p6 = pnand %p1242_p5, %p1228_p11  ;;  %p1250_p12 = scmp.lt.s32.totalorder %s1248_s13, %s1241_s29 }
  0x3f   : > { %p1245_p9 = pneg %p1244_p6  ;;  %p1251_p0 = por %p1250_p12, %p1249_p10 }
  0x41   : > { %p1252_p2 = pnand %p1251_p0, %p1245_p9 }
  0x43   : > { %1255 = shalt.err (!%p1252_p2)
}
  0x44   : > { %1140 = dma.hbm_to_vmem [thread:$0]  (!%p1461_p8), %s1457_s7, 2048, %s1459_s10, %s1465_s26, %s1327_s19, %s1327_s19, %s1328_s20  }
  0x45   : > { %p1784_p11 = scmp.ne.s32.totalorder %s1781_s28, 0 }
  0x46   : > { %s250_s14 = sand.u32 (!%p1784_p11), 1, %s1316_s24   ;;  %p1785_p13 = scmp.ne.s32.totalorder (!%p1784_p11), %s1780_s27, 0 }
  0x47   : > { %248 = sbr.rel (%p1784_p11) target bundleno = 1136 (0x470), region = 44  ;;  %s914_s30 = sshll.u32 (!%p1784_p11), %s250_s14, 7 }
  0x48   : > { %s251_s15 = scalar_lea.sflag (!%p1784_p11), [#allocation7], %s250_s14  ;;  %s1499_s16 = scalar_lea.vmem (!%p1784_p11), [#allocation6], %s914_s30 }
  0x4e   : > { %1299 = dma.done.wait (%p1785_p13), %s251_s15, 2048  }
  0x4f   : > { %1301 = vsyncadd (%p1785_p13), %s251_s15, 4294965248  ;;  %p1786_p3 = scmp.eq.s32.totalorder %s1395_s5, 0 }
  0x51   : > { %1303 = dma.done.wait (%p1786_p3), [#allocation10], 2048   ;;  %p1787_p8 = pmov %p1786_p3 }
  0x52   : > { %p286_p7 = scmp.lt.s32.totalorder %s1395_s5, 4  ;;  %p1788_p1 = scmp.ne.s32.totalorder %s1395_s5, 0 }
  0x53   : > { %1305 = vsyncadd (%p1787_p8), [#allocation10], 4294965248  ;;  %vm293_vm0 = vcmask (!%p1788_p1), 2048   ;;  %v1330_v0 = vmov (!%p1788_p1), -1e+30   ;;  %v1331_v1 = vmov (!%p1788_p1), 0.0  }
  0x54   : > { %s1511_s28 = scalar_select %p286_p7, %s1395_s5, 4 }
  0x55   : > { %292 = sbr.rel (%p1788_p1) target bundleno = 92 (0x5c), region = 56  ;;  %294 = vst.msk [vmem:[#allocation2] sm:$0x7] (!%p1788_p1), %vm293_vm0, %v1330_v0  ;;  %295 = vst.msk [vmem:[#allocation3] sm:$0x7] (!%p1788_p1), %vm293_vm0, %v1331_v1 }
  0x56   : > { %s288_s7 = scalar_lea.vmem %s1771_s1, %s1511_s28  ;;  %296 = vst [vmem:[#allocation4] sm:$0x7] (!%p1788_p1), %v1331_v1 }
  0x5c PF: > { %v313_v2 = vld [vmem:[#allocation9] sm:$0xff]  ;;  %v314_v3 = vld [vmem:[#allocation9 + $0x8] sm:$0xff]  ;;  %v315_v4 = vld [vmem:[#allocation9 + $0x10] sm:$0xff]  ;;  %s552_s17 = sld [smem:[#allocation5]]  ;;  %vm605_vm1 = vcmask 130112   ;;  %vm612_vm2 = vcmask 195712  }
  0x5d   : > { %v1067_v5 = vpack.c.bf16 %v314_v3, %v313_v2  ;;  %v316_v6 = vld [vmem:[#allocation9 + $0x18] sm:$0xff]  ;;  %v317_v8 = vld [vmem:[#allocation9 + $0x20] sm:$0xff]  ;;  %v318_v9 = vld [vmem:[#allocation9 + $0x28] sm:$0xff]  ;;  %vm619_vm3 = vcmask 261312   ;;  %vm626_vm4 = vcmask 326912   ;;  %vm633_vm5 = vcmask 392512  }
  0x5e   : > { %v1071_v7 = vpack.c.bf16 %v316_v6, %v315_v4  ;;  %v1075_v10 = vpack.c.bf16 %v318_v9, %v317_v8  ;;  %v319_v11 = vld [vmem:[#allocation9 + $0x30] sm:$0xff]  ;;  %v320_v12 = vld [vmem:[#allocation9 + $0x38] sm:$0xff]  ;;  %v1520_v13 = vld [vmem:[%s1499_s16] sm:$0xff]  ;;  %vm640_vm6 = vcmask 458112   ;;  %vm647_vm7 = vcmask 523712   ;;  %p921_p4 = scmp.ne.s32.totalorder %s1395_s5, 4 }
  0x5f   : > { %1068 = vmatprep.subr.bf16.mxu0 %v1067_v5  ;;  %1008 = vmatprep.mubr.f32.mxu0 %v1520_v13  ;;  %v1524_v14 = vld [vmem:[%s1499_s16 + $0x10] sm:$0xff]  ;;  %v1527_v15 = vld [vmem:[%s1499_s16 + $0x18] sm:$0xff]  ;;  %v1530_v16 = vld [vmem:[%s1499_s16 + $0x20] sm:$0xff]  ;;  %v1079_v27 = vpack.c.bf16 %v320_v12, %v319_v11  ;;  %vm654_vm8 = vcmask 589312   ;;  %vm661_vm9 = vcmask 654912   ;;  %vm668_vm10 = vcmask 720512  }
  0x60   : > { %1070 = vmatpush3.bf16.msra.mxu0 %v1067_v5  ;;  %v1103_v17 = vpack.c.bf16 %v1527_v15, %v1524_v14  ;;  %v1535_v18 = vld [vmem:[%s1499_s16 + $0x28] sm:$0xff]  ;;  %v1538_v19 = vld [vmem:[%s1499_s16 + $0x30] sm:$0xff]  ;;  %v1541_v20 = vld [vmem:[%s1499_s16 + $0x38] sm:$0xff]  ;;  %vm675_vm11 = vcmask 786112   ;;  %vm682_vm12 = vcmask 851712   ;;  %vm689_vm13 = vcmask 917312  }
  0x61   : > { %1072 = vmatprep.subr.bf16.mxu0 %v1071_v7  ;;  %v321_v21 = vld [vmem:[#allocation9 + $0x40] sm:$0xff]  ;;  %v1106_v22 = vpack.c.bf16 %v1535_v18, %v1530_v16  ;;  %v1109_v23 = vpack.c.bf16 %v1541_v20, %v1538_v19  ;;  %v1551_v25 = vld [vmem:[%s1499_s16 + $0x48] sm:$0xff]  ;;  %v1554_v26 = vld [vmem:[%s1499_s16 + $0x50] sm:$0xff]  ;;  %vm696_vm14 = vcmask 982912   ;;  %vm703_vm15 = vcmask 1048512  }
  0x62   : > { %v1548_v24 = vld [vmem:[%s1499_s16 + $0x40] sm:$0xff]  ;;  %v1559_v29 = vld [vmem:[%s1499_s16 + $0x58] sm:$0xff]  ;;  %v1565_v31 = vld [vmem:[%s1499_s16 + $0x68] sm:$0xff] }
  0x63   : > { %v1112_v28 = vpack.c.bf16 %v1551_v25, %v1548_v24  ;;  %v1562_v30 = vld [vmem:[%s1499_s16 + $0x60] sm:$0xff]  ;;  %v322_v32 = vld [vmem:[#allocation9 + $0x48] sm:$0xff]  ;;  %v1115_v33 = vpack.c.bf16 %v1559_v29, %v1554_v26  ;;  %v1572_v35 = vld [vmem:[%s1499_s16 + $0x70] sm:$0xff] }
  0x64   : > { %1074 = vmatpush3.bf16.msra.mxu0 %v1071_v7  ;;  %v1118_v34 = vpack.c.bf16 %v1565_v31, %v1562_v30  ;;  %v1575_v36 = vld [vmem:[%s1499_s16 + $0x78] sm:$0xff]  ;;  %v1083_v38 = vpack.c.bf16 %v322_v32, %v321_v21  ;;  %v323_v39 = vld [vmem:[#allocation9 + $0x50] sm:$0xff]  ;;  %v325_v42 = vld [vmem:[#allocation9 + $0x60] sm:$0xff] }
  0x65   : > { %1076 = vmatprep.subr.bf16.mxu0 %v1075_v10  ;;  %v1121_v37 = vpack.c.bf16 %v1575_v36, %v1572_v35  ;;  %v324_v40 = vld [vmem:[#allocation9 + $0x58] sm:$0xff]  ;;  %v326_v43 = vld [vmem:[#allocation9 + $0x68] sm:$0xff]  ;;  %v327_v45 = vld [vmem:[#allocation9 + $0x70] sm:$0xff] }
  0x66   : > { %v1087_v41 = vpack.c.bf16 %v324_v40, %v323_v39  ;;  %v1091_v44 = vpack.c.bf16 %v326_v43, %v325_v42  ;;  %v328_v46 = vld [vmem:[#allocation9 + $0x78] sm:$0xff]  ;;  %v1580_v48 = vld [vmem:[%s1499_s16 + $0x8] sm:$0xff]  ;;  %v1600_v49 = vld [vmem:[%s1773_s3] ss:$0 sm:$0xff] }
  0x67   : > { %v1095_v47 = vpack.c.bf16 %v328_v46, %v327_v45  ;;  %v1607_v54 = vld [vmem:[%s1774_s4] ss:$0 sm:$0xff] }
  0x68   : > { %1078 = vmatpush3.bf16.msra.mxu0 %v1075_v10 }
  0x69   : > { %1080 = vmatprep.subr.bf16.mxu0 %v1079_v27 }
  0x6c   : > { %1082 = vmatpush3.bf16.msra.mxu0 %v1079_v27 }
  0x6d   : > { %1084 = vmatprep.subr.bf16.mxu0 %v1083_v38 }
  0x70   : > { %1086 = vmatpush3.bf16.msra.mxu0 %v1083_v38 }
  0x71   : > { %1088 = vmatprep.subr.bf16.mxu0 %v1087_v41 }
  0x74   : > { %1090 = vmatpush3.bf16.msra.mxu0 %v1087_v41 }
  0x75   : > { %1092 = vmatprep.subr.bf16.mxu0 %v1091_v44 }
  0x78   : > { %1094 = vmatpush3.bf16.msra.mxu0 %v1091_v44 }
  0x79   : > { %1096 = vmatprep.subr.bf16.mxu0 %v1095_v47 }
  0x7c   : > { %1098 = vmatpush3.bf16.msra.mxu0 %v1095_v47 }
  0x7f   : > { %1009 = vmatmul.mubr.f32.vlgmr.msra.gmra.mrb[0].mxu0 %v1580_v48 }
  0x80   : > { %1011 = vmatprep.mubr.f32.mxu0 %v1524_v14 }
  0x83   : > { %1012 = vmatmul.mubr.f32.gmra.mrb[2].mxu0 %v1527_v15 }
  0x84   : > { %1014 = vmatprep.mubr.f32.mxu0 %v1530_v16 }
  0x87   : > { %1015 = vmatmul.mubr.f32.gmra.mrb[4].mxu0 %v1535_v18 }
  0x88   : > { %1017 = vmatprep.mubr.f32.mxu0 %v1538_v19 }
  0x8b   : > { %1018 = vmatmul.mubr.f32.gmra.mrb[6].mxu0 %v1541_v20 }
  0x8c   : > { %1020 = vmatprep.mubr.f32.mxu0 %v1548_v24 }
  0x8f   : > { %1021 = vmatmul.mubr.f32.gmra.mrb[8].mxu0 %v1551_v25 }
  0x90   : > { %1023 = vmatprep.mubr.f32.mxu0 %v1554_v26 }
  0x93   : > { %1024 = vmatmul.mubr.f32.gmra.mrb[10].mxu0 %v1559_v29 }
  0x94   : > { %1026 = vmatprep.mubr.f32.mxu0 %v1562_v30 }
  0x97   : > { %1027 = vmatmul.mubr.f32.gmra.mrb[12].mxu0 %v1565_v31 }
  0x98   : > { %1029 = vmatprep.mubr.f32.mxu0 %v1572_v35 }
  0x9b   : > { %1030 = vmatmul.mubr.f32.gmra.mrb[14].mxu0 %v1575_v36 }
 0x152   : > { %v1010_v50 = vpop.f32.mrb[0].mxu0 }
 0x153   : > { %v408_v51 = vadd.f32 %v1010_v50, %v1600_v49  ;;  %v402_v52 = vpop.f32.mrb[1].mxu0 }
 0x154   : > { %v403_v53 = vadd.f32 %v1600_v49, %v402_v52 }
 0x155   : > { %v482_v55 = vmax.f32 %v408_v51, 0.0 }
 0x156   : > { %v1013_v56 = vpop.f32.mrb[2].mxu0  ;;  %v481_v57 = vmax.f32 %v403_v53, 0.0 }
 0x157   : > { %v418_v58 = vadd.f32 %v1013_v56, %v1600_v49  ;;  %v412_v59 = vpop.f32.mrb[3].mxu0  ;;  %v505_v60 = vmul.f32 %v1607_v54, %v482_v55 }
 0x158   : > { %v413_v61 = vadd.f32 %v1600_v49, %v412_v59  ;;  %v504_v4 = vmul.f32 %v1607_v54, %v481_v57 }
 0x159   : > { %v484_v62 = vmax.f32 %v418_v58, 0.0  ;;  %522 = vadd.xlane.f32.xlu0 %v505_v60 }
 0x15a   : > { %v1016_v63 = vpop.f32.mrb[4].mxu0  ;;  %v483_v0 = vmax.f32 %v413_v61, 0.0 }
 0x15b   : > { %v428_v1 = vadd.f32 %v1016_v63, %v1600_v49  ;;  %v422_v2 = vpop.f32.mrb[5].mxu0  ;;  %v507_v3 = vmul.f32 %v1607_v54, %v484_v62 }
 0x15c   : > { %v423_v5 = vadd.f32 %v1600_v49, %v422_v2  ;;  %v506_v11 = vmul.f32 %v1607_v54, %v483_v0 }
 0x15d   : > { %526 = vadd.xlane.f32.xlu1 %v507_v3  ;;  %520 = vadd.xlane.f32.xlu0 %v504_v4  ;;  %v486_v8 = vmax.f32 %v428_v1, 0.0 }
 0x15e   : > { %v485_v6 = vmax.f32 %v423_v5, 0.0  ;;  %v1019_v7 = vpop.f32.mrb[6].mxu0 }
 0x15f   : > { %v438_v9 = vadd.f32 %v1019_v7, %v1600_v49  ;;  %v432_v10 = vpop.f32.mrb[7].mxu0  ;;  %v509_v41 = vmul.f32 %v1607_v54, %v486_v8 }
 0x160   : > { %v433_v12 = vadd.f32 %v1600_v49, %v432_v10  ;;  %v508_v21 = vmul.f32 %v1607_v54, %v485_v6 }
 0x161   : > { %524 = vadd.xlane.f32.xlu1 %v506_v11  ;;  %v488_v38 = vmax.f32 %v438_v9, 0.0 }
 0x162   : > { %v487_v27 = vmax.f32 %v433_v12, 0.0  ;;  %v1022_v32 = vpop.f32.mrb[8].mxu0  ;;  %528 = vadd.xlane.f32.xlu0 %v508_v21  ;;  %v570_v12 = vlaneseq }
 0x163   : > { %v448_v39 = vadd.f32 %v1022_v32, %v1600_v49  ;;  %v442_v40 = vpop.f32.mrb[9].mxu0  ;;  %v511_v51 = vmul.f32 %v1607_v54, %v488_v38  ;;  %v1644_v38 = vstv %s552_s17 }
 0x164   : > { %v443_v42 = vadd.f32 %v1600_v49, %v442_v40  ;;  %v510_v43 = vmul.f32 %v1607_v54, %v487_v27  ;;  %v1639_v21 = vand.u32 127, %v570_v12  ;;  %v1641_v27 = vshrl.u32 %v570_v12, 7 }
 0x165   : > { %530 = vadd.xlane.f32.xlu1 %v509_v41  ;;  %v490_v46 = vmax.f32 %v448_v39, 0.0 }
 0x166   : > { %v489_v44 = vmax.f32 %v443_v42, 0.0  ;;  %v1025_v45 = vpop.f32.mrb[10].mxu0  ;;  %532 = vadd.xlane.f32.xlu0 %v510_v43  ;;  %v600_v32 = vadd.s32 4294967288, %v1639_v21  ;;  %v607_v39 = vadd.s32 4294967280, %v1639_v21  ;;  %v614_v40 = vadd.s32 4294967272, %v1639_v21 }
 0x167   : > { %v458_v47 = vadd.f32 %v1025_v45, %v1600_v49  ;;  %v452_v50 = vpop.f32.mrb[11].mxu0  ;;  %v513_v60 = vmul.f32 %v1607_v54, %v490_v46  ;;  %v621_v43 = vadd.s32 4294967264, %v1639_v21 }
 0x168   : > { %v453_v52 = vadd.f32 %v1600_v49, %v452_v50  ;;  %v512_v53 = vmul.f32 %v1607_v54, %v489_v44  ;;  %v603_v45 = vsub.s32 %v600_v32, %v1641_v27  ;;  %v610_v50 = vsub.s32 %v607_v39, %v1641_v27 }
 0x169   : > { %534 = vadd.xlane.f32.xlu1 %v511_v51  ;;  %v492_v57 = vmax.f32 %v458_v47, 0.0  ;;  %v628_v47 = vadd.s32 4294967256, %v1639_v21  ;;  %v635_v51 = vadd.s32 4294967248, %v1639_v21  ;;  %v656_v39 = vadd.s32 4294967224, %v1639_v21 }
 0x16a   : > { %v491_v55 = vmax.f32 %v453_v52, 0.0  ;;  %v1028_v56 = vpop.f32.mrb[12].mxu0  ;;  %536 = vadd.xlane.f32.xlu0 %v512_v53  ;;  %v617_v52 = vsub.s32 %v614_v40, %v1641_v27 }
 0x16b   : > { %v468_v58 = vadd.f32 %v1028_v56, %v1600_v49  ;;  %v462_v59 = vpop.f32.mrb[13].mxu0  ;;  %v515_v4 = vmul.f32 %v1607_v54, %v492_v57  ;;  %v624_v57 = vsub.s32 %v621_v43, %v1641_v27 }
 0x16c   : > { %v463_v61 = vadd.f32 %v1600_v49, %v462_v59  ;;  %v514_v62 = vmul.f32 %v1607_v54, %v491_v55 }
 0x16d   : > { %538 = vadd.xlane.f32.xlu1 %v513_v60  ;;  %v494_v1 = vmax.f32 %v468_v58, 0.0 }
 0x16e   : > { %v493_v63 = vmax.f32 %v463_v61, 0.0  ;;  %v1031_v0 = vpop.f32.mrb[14].mxu0  ;;  %540 = vadd.xlane.f32.xlu0 %v514_v62  ;;  %v631_v62 = vsub.s32 %v628_v47, %v1641_v27 }
 0x16f   : > { %v478_v2 = vadd.f32 %v1031_v0, %v1600_v49  ;;  %v472_v3 = vpop.f32.mrb[15].mxu0  ;;  %v517_v9 = vmul.f32 %v1607_v54, %v494_v1  ;;  %v638_v0 = vsub.s32 %v635_v51, %v1641_v27  ;;  %v642_v1 = vadd.s32 4294967240, %v1639_v21 }
 0x170   : > { %v473_v5 = vadd.f32 %v1600_v49, %v472_v3  ;;  %v516_v6 = vmul.f32 %v1607_v54, %v493_v63  ;;  %v670_v51 = vadd.s32 4294967208, %v1639_v21 }
 0x171   : > { %542 = vadd.xlane.f32.xlu1 %v515_v4  ;;  %v496_v8 = vmax.f32 %v478_v2, 0.0  ;;  %v645_v32 = vsub.s32 %v642_v1, %v1641_v27 }
 0x172   : > { %v495_v7 = vmax.f32 %v473_v5, 0.0  ;;  %544 = vadd.xlane.f32.xlu0 %v516_v6  ;;  %v649_v6 = vadd.s32 4294967232, %v1639_v21 }
 0x173   : > { %v519_v11 = vmul.f32 %v1607_v54, %v496_v8 }
 0x174   : > { %v518_v10 = vmul.f32 %v1607_v54, %v495_v7  ;;  %v598_v54 = vsub.s32 %v1639_v21, %v1641_v27 }
 0x175   : > { %546 = vadd.xlane.f32.xlu1 %v517_v9 }
 0x176   : > { %548 = vadd.xlane.f32.xlu0 %v518_v10 }
 0x179   : > { %550 = vadd.xlane.f32.xlu1 %v519_v11 }
 0x1e6   : > { %v523_v49 = vpop.xlane.xlu0 %522 }
 0x1e7   : > { %v555_v46 = vadd.f32 %v1644_v38, %v523_v49 }
 0x1e9   : > { %v604_v60 = vrot.slane %v555_v46, %v603_v45 }
 0x1ea   : > { %v527_v41 = vpop.xlane.xlu1 %526  ;;  %v521_v42 = vpop.xlane.xlu0 %520 }
 0x1eb   : > { %v554_v44 = vadd.f32 %v1644_v38, %v521_v42  ;;  %v557_v53 = vadd.f32 %v1644_v38, %v527_v41  ;;  %v663_v42 = vadd.s32 4294967216, %v1639_v21 }
 0x1ed   : > { %v599_v55 = vrot.slane %v554_v44, %v598_v54  ;;  %v618_v2 = vrot.slane %v557_v53, %v617_v52  ;;  %v652_v54 = vsub.s32 %v649_v6, %v1641_v27 }
 0x1ee   : > { %v525_v56 = vpop.xlane.xlu1 %524 }
 0x1ef   : > { %v556_v58 = vadd.f32 %v1644_v38, %v525_v56  ;;  %v529_v59 = vpop.xlane.xlu0 %528  ;;  %v606_v3 = vsel %vm605_vm1, %v604_v60, %v599_v55  ;;  %v666_v56 = vsub.s32 %v663_v42, %v1641_v27  ;;  %vm709_vm1 = vcmask 1042432  }
 0x1f0   : > { %v558_v61 = vadd.f32 %v1644_v38, %v529_v59 }
 0x1f1   : > { %v611_v63 = vrot.slane %v556_v58, %v610_v50  ;;  %v659_v50 = vsub.s32 %v656_v39, %v1641_v27 }
 0x1f2   : > { %v625_v4 = vrot.slane %v558_v61, %v624_v57  ;;  %v531_v5 = vpop.xlane.xlu1 %530  ;;  %v677_v57 = vadd.s32 4294967200, %v1639_v21 }
 0x1f3   : > { %v613_v7 = vsel %vm612_vm2, %v611_v63, %v606_v3  ;;  %v559_v8 = vadd.f32 %v1644_v38, %v531_v5  ;;  %v533_v9 = vpop.xlane.xlu0 %532  ;;  %v673_v63 = vsub.s32 %v670_v51, %v1641_v27  ;;  %v691_v5 = vadd.s32 4294967184, %v1639_v21 }
 0x1f4   : > { %v620_v10 = vsel %vm619_vm3, %v618_v2, %v613_v7  ;;  %v560_v11 = vadd.f32 %v1644_v38, %v533_v9  ;;  %vm733_vm2 = vcmask 2048   ;;  %vm1334_vm3 = vmmov 0  }
 0x1f5   : > { %v627_v12 = vsel %vm626_vm4, %v625_v4, %v620_v10  ;;  %v632_v49 = vrot.slane %v559_v8, %v631_v62  ;;  %v680_v4 = vsub.s32 %v677_v57, %v1641_v27 }
 0x1f6   : > { %v639_v40 = vrot.slane %v560_v11, %v638_v0  ;;  %v535_v41 = vpop.xlane.xlu1 %534  ;;  %v684_v0 = vadd.s32 4294967192, %v1639_v21 }
 0x1f7   : > { %v634_v43 = vsel %vm633_vm5, %v632_v49, %v627_v12  ;;  %v561_v44 = vadd.f32 %v1644_v38, %v535_v41  ;;  %v537_v45 = vpop.xlane.xlu0 %536  ;;  %v698_v12 = vadd.s32 4294967176, %v1639_v21 }
 0x1f8   : > { %v562_v46 = vadd.f32 %v1644_v38, %v537_v45  ;;  %v641_v52 = vsel %vm640_vm6, %v639_v40, %v634_v43  ;;  %v687_v11 = vsub.s32 %v684_v0, %v1641_v27  ;;  %v694_v40 = vsub.s32 %v691_v5, %v1641_v27 }
 0x1f9   : > { %v646_v47 = vrot.slane %v561_v44, %v645_v32  ;;  %v701_v45 = vsub.s32 %v698_v12, %v1641_v27 }
 0x1fa   : > { %v653_v53 = vrot.slane %v562_v46, %v652_v54  ;;  %v539_v55 = vpop.xlane.xlu1 %538 }
 0x1fb   : > { %v648_v58 = vsel %vm647_vm7, %v646_v47, %v641_v52  ;;  %v563_v59 = vadd.f32 %v1644_v38, %v539_v55  ;;  %v541_v60 = vpop.xlane.xlu0 %540 }
 0x1fc   : > { %v564_v61 = vadd.f32 %v1644_v38, %v541_v60  ;;  %v655_v1 = vsel %vm654_vm8, %v653_v53, %v648_v58  ;;  %v1333_v60 = vmov 0.0|0.0  }
 0x1fd   : > { %v660_v62 = vrot.slane %v563_v59, %v659_v50  ;;  %v919_v50 = vld [vmem:[%s288_s7] ss:$0 sm:$0xff]  ;;  %v1332_v59 = vmov 0   ;;  %1099 = vmatprep.subr.bf16.mxu1 %v1333_v60 }
 0x1fe   : > { %v667_v2 = vrot.slane %v564_v61, %v666_v56  ;;  %v543_v3 = vpop.xlane.xlu1 %542  ;;  %vm577_vm0 = vcmp.eq.s32.totalorder %v919_v50, %v1641_v27  ;;  %1189 = vset.pattern.permute.xlu1 %v1332_v59  ;;  %1190 = vset.pattern.permute.xlu0 %v1332_v59  ;;  %v1336_v61 = vmov (!%p921_p4), 0  }
 0x1ff   : > { %v662_v6 = vsel %vm661_vm9, %v660_v62, %v655_v1  ;;  %v565_v7 = vadd.f32 %v1644_v38, %v543_v3  ;;  %v545_v8 = vpop.xlane.xlu0 %544 }
 0x200   : > { %v566_v9 = vadd.f32 %v1644_v38, %v545_v8  ;;  %v669_v49 = vsel %vm668_vm10, %v667_v2, %v662_v6 }
 0x201   : > { %v674_v10 = vrot.slane %v565_v7, %v673_v63 }
 0x202   : > { %v681_v32 = vrot.slane %v566_v9, %v680_v4  ;;  %v547_v39 = vpop.xlane.xlu1 %546 }
 0x203   : > { %v676_v41 = vsel %vm675_vm11, %v674_v10, %v669_v49  ;;  %v567_v54 = vadd.f32 %v1644_v38, %v547_v39  ;;  %v549_v42 = vpop.xlane.xlu0 %548 }
 0x204   : > { %v568_v43 = vadd.f32 %v1644_v38, %v549_v42  ;;  %v683_v46 = vsel %vm682_vm12, %v681_v32, %v676_v41 }
 0x205   : > { %v688_v44 = vrot.slane %v567_v54, %v687_v11 }
 0x206   : > { %v695_v47 = vrot.slane %v568_v43, %v694_v40  ;;  %v551_v21 = vpop.xlane.xlu1 %550 }
 0x207   : > { %v569_v51 = vadd.f32 %v1644_v38, %v551_v21  ;;  %v690_v52 = vsel %vm689_vm13, %v688_v44, %v683_v46  ;;  %v1100_v38 = vpack.c.bf16 %v1580_v48, %v1520_v13  ;;  %v713_v13 = vld [vmem:[#allocation2] sm:$0x7] }
 0x208   : > { %v697_v55 = vsel %vm696_vm14, %v695_v47, %v690_v52 }
 0x209   : > { %v702_v53 = vrot.slane %v569_v51, %v701_v45  ;;  %1101 = vmatpush3.bf16.msra.mxu1 %v1100_v38 }
 0x20a   : > { %1102 = vmatprep.subr.bf16.mxu1 %v1333_v60 }
 0x20b   : > { %v704_v56 = vsel %vm703_vm15, %v702_v53, %v697_v55 }
 0x20c   : > { %v708_v57 = vsel %vm577_vm0, %v704_v56, -1e+30 }
 0x20d   : > { %v710_v58 = vsel %vm709_vm1, %v708_v57, -inf  ;;  %1104 = vmatpush3.bf16.msra.mxu1 %v1103_v17  ;;  %v1335_v17 = vmov 0.0  }
 0x20e   : > { %711 = vmax.xlane.f32.xlu0 %v710_v58  ;;  %1105 = vmatprep.subr.bf16.mxu1 %v1333_v60 }
 0x20f   : > { %1064 = vmatprep.mubr.msk.f32.mxu1 %vm1334_vm3, %v1335_v17 }
 0x211   : > { %1107 = vmatpush3.bf16.msra.mxu1 %v1106_v22 }
 0x212   : > { %1108 = vmatprep.subr.bf16.mxu1 %v1333_v60 }
 0x215   : > { %1110 = vmatpush3.bf16.msra.mxu1 %v1109_v23 }
 0x216   : > { %1111 = vmatprep.subr.bf16.mxu1 %v1333_v60 }
 0x219   : > { %1113 = vmatpush3.bf16.msra.mxu1 %v1112_v28  ;;  %v727_v28 = vld [vmem:[#allocation3] sm:$0x7] }
 0x21a   : > { %1114 = vmatprep.subr.bf16.mxu1 %v1333_v60 }
 0x21d   : > { %1116 = vmatpush3.bf16.msra.mxu1 %v1115_v33  ;;  %v735_v33 = vld [vmem:[#allocation4] sm:$0x7] }
 0x21e   : > { %1117 = vmatprep.subr.bf16.mxu1 %v1333_v60 }
 0x221   : > { %1119 = vmatpush3.bf16.msra.mxu1 %v1118_v34 }
 0x222   : > { %1120 = vmatprep.subr.bf16.mxu1 %v1333_v60 }
 0x225   : > { %1122 = vmatpush3.bf16.msra.mxu1 %v1121_v37 }
 0x29b   : > { %v712_v14 = vpop.xlane.xlu0 %711 }
 0x29c   : > { %v714_v15 = vmax.f32 %v713_v13, %v712_v14 }
 0x29e   : > { %v715_v16 = vsub.f32 %v713_v13, %v714_v15  ;;  %814 = vst.msk [vmem:[#allocation2] sm:$0x7] %vm733_vm2, %v714_v15  ;;  %720 = vperm.xlu1 %1189, %v714_v15  }
 0x2a0   : > { %v716_v25 = vmul.f32 1.442695, %v715_v16 }
 0x31d   : > { %v721_v18 = vpop.permute.xlu1 %720 }
 0x31e   : > { %v723_v19 = vsub.f32 %v708_v57, %v721_v18 }
 0x320   : > { %v724_v20 = vmul.f32 1.442695, %v723_v19 }
 0x322   : > { %1191 = vpow2.f32 %v724_v20 }
 0x323   : > { %1193 = vpow2.f32 %v716_v25 }
 0x32c   : > { %v1192_v22 = vpop.eup %1191 }
 0x32d   : > { %1065 = vmatmul.mubr.msk.f32.vlgmr.msra.gmra.mrb[0].mxu1 %vm577_vm0, %v1192_v22  ;;  %v726_v23 = vsel %vm577_vm0, %v1192_v22, 0.0  ;;  %v1194_v26 = vpop.eup %1193 }
 0x32e   : > { %v729_v24 = vsel %vm709_vm1, %v726_v23, 0.0  ;;  %v728_v29 = vmul.f32 %v1194_v26, %v727_v28 }
 0x32f   : > { %730 = vadd.xlane.f32.xlu0 %v729_v24 }
 0x345   : > { %738 = vperm.xlu0 %1190, %v1194_v26  }
 0x349   : > { %1195 = vset.pattern.permute.xlu0 (!%p921_p4), %v1336_v61 }
 0x3bc   : > { %v731_v30 = vpop.xlane.xlu0 %730 }
 0x3bd   : > { %v732_v31 = vadd.f32 %v731_v30, %v728_v29 }
 0x3bf   : > { %734 = vst.msk [vmem:[#allocation3] sm:$0x7] %vm733_vm2, %v732_v31 }
 0x3c4   : > { %v739_v34 = vpop.permute.xlu0 %738 }
 0x3c5   : > { %v741_v35 = vmul.f32 %v739_v34, %v735_v33 }
 0x3c6   : > { %v819_v27 = vld [vmem:[#allocation3] sm:$0x7] (!%p921_p4) }
 0x3c7   : > { %v820_v62 = vmax.f32 (!%p921_p4), %v819_v27, 1e-30 }
 0x3c9   : > { %1196 = vrcp.f32 (!%p921_p4), %v820_v62 }
 0x3d3   : > { %v1197_v63 = vpop.eup (!%p921_p4), %1196 }
 0x3d4   : > { %825 = vperm.xlu0 (!%p921_p4), %1195, %v1197_v63  }
 0x3fd   : > { %818 = sbr.rel (%p921_p4) target bundleno = 1111 (0x457), region = 60 }
 0x400   : > { %v808_v36 = vpop.f32.mrb[0].mxu1 }
 0x401   : > { %v812_v37 = vadd.f32 %v808_v36, %v741_v35  ;;  %v1066_v48 = vpop.f32.mrb[1].mxu1 }
 0x403   : > { %813 = vst [vmem:[#allocation4] sm:$0x7] %v812_v37 }
 0x40a   : > { %v821_v0 = vld [vmem:[#allocation4] sm:$0x7] }
 0x453   : > { %v826_v1 = vpop.permute.xlu0 %825 }
 0x454   : > { %v828_v2 = vmul.f32 %v826_v1, %v821_v0 }
 0x456   : > { %829 = vst [vmem:[#allocation11] sm:$0x7] %v828_v2 }
 0x457 PF: > { %p1144_p5 = scmp.eq.s32.totalorder %s1395_s5, 4  ;;  %s1337_s22 = smov [#allocation11]  }
 0x458   : > { %s837_s29 = sshll.u32 %s1337_s22, 4  ;;  %s838_s29 = int_to_ptr.vmem [resolvable:$true] %s837_s29 }
 0x459   : > { %s1256_s11 = scalar_lea.vmem %s838_s29, 64  ;;  %p1263_p12 = scmp.lt.s32.totalorder %s838_s29, %s838_s29 }
 0x45a   : > { %p1257_p6 = scmp.ne.s32.totalorder %s838_s29, %s1256_s11  ;;  %p1264_p0 = scmp.lt.s32.totalorder %s1256_s11, %s1256_s11 }
 0x45c   : > { %p1258_p9 = pnand %p1257_p6, %p1144_p5  ;;  %p1265_p2 = por %p1264_p0, %p1263_p12 }
 0x45e   : > { %p1259_p10 = pneg %p1258_p9 }
 0x460   : > { %p1266_p11 = pnand %p1265_p2, %p1259_p10 }
 0x462   : > { %1269 = shalt.err (!%p1266_p11)
}
 0x463   : > { %s1270_s14 = scalar_lea.hbm %s1776_s6, 64 }
 0x464   : > { %p1271_p13 = scmp.ne.s32.totalorder %s1776_s6, %s1270_s14  ;;  %p1276_p7 = scmp.lt.u32.totalorder %s1270_s14, %s1776_s6 }
 0x466   : > { %p1272_p3 = pnand %p1271_p13, %p1144_p5 }
 0x468   : > { %p1273_p8 = pneg %p1272_p3 }
 0x46a   : > { %p1278_p1 = pnand %p1276_p7, %p1273_p8 }
 0x46c   : > { %1281 = shalt.err (!%p1278_p1)
}
 0x46d   : > { %1130 = dma.vmem_to_hbm [thread:$0]  (%p1144_p5), %s838_s29, 64, %s1776_s6, [#allocation8]  }
 0x46e   : > { %1307 = dma.done.wait (%p1144_p5), [#allocation8], 64  }
 0x46f   : > { %1309 = vsyncadd (%p1144_p5), [#allocation8], 4294967232 }
 0x470 PF: > { %s1789_s7 = smov %s1450_s23  ;;  %p19_p4 = scmp.ge.s32.totalorder %s1421_s8, 7  }
 0x471   : > { %s1790_s23 = smov %s1316_s24  ;;  %s1791_s24 = smov %s1320_s25 }
 0x472   : > { %s1792_s25 = smov %s1789_s7  ;;  %s1793_s26 = smov %s1421_s8 }
 0x473   :  { %21 = sbr.rel (!%p19_p4) target bundleno = 7 (0x7), region = 96 }
 0x47a   :  { %850 = vsyncpa [#allocation7], 1 }
 0x47b   :  { %852 = vsyncpa [#allocation7 + $0x1], 1 }
 0x47c   :  { %853 = vsyncpa [#allocation10], 1 }
 0x47d   :  { %854 = vsyncpa [#allocation8], 1 }
 0x47e   :  { %856 = vsyncpa [#allocation8 + $0x1], 1 }

</bundles_post_ra>
